<compile_context>
chip_gen: v5e
topology: v5e:2x2
jax: 0.10.0
libtpu: 0.0.40
codegen_flags: <defaults>
</compile_context>

<pallas_src>
import functools

import jax
import jax.numpy as jnp
from jax.experimental import pallas as pl
from jax.experimental.pallas import tpu as pltpu


def _round_up(v, m):
    return ((v + m - 1) // m) * m


def _triplet_block_kernel(xb_ref, xa_ref, labc_ref, labr_ref, out_ref, *, margin):
    """One row-block of batch-hard triplet mining.

    xb_ref  : (R, Dp)      anchor rows, native dtype
    xa_ref  : (Np, Dp)     full padded feature matrix, native dtype (resident)
    labc_ref: (R, 1)       int32 labels of anchor rows   (-1 => padded row)
    labr_ref: (1, Np)      int32 labels of all columns   (-1 => padded column)
    out_ref : (1, 8, 128)  lane 0 = sum of hinge terms, lane 1 = number of valid rows
    """
    xb = xb_ref[...]
    xa = xa_ref[...]

    # Gram on the MXU; operands stay in native dtype (bf16 feeds MXU directly),
    # accumulation in f32.
    gram = jax.lax.dot_general(
        xb, xa, (((1,), (1,)), ((), ())),
        preferred_element_type=jnp.float32)                           # (R, Np)

    # Squared norms in f32 (guards against cancellation for low-precision inputs).
    xb_f = xb.astype(jnp.float32)
    xa_f = xa.astype(jnp.float32)
    sq_b = jnp.sum(xb_f * xb_f, axis=1, keepdims=True)                # (R, 1)
    sq_a = jnp.transpose(jnp.sum(xa_f * xa_f, axis=1, keepdims=True))  # (1, Np)

    dist2 = sq_b + sq_a - 2.0 * gram                                  # (R, Np) squared dists

    labc = labc_ref[...]                                              # (R, 1)
    labr = labr_ref[...]                                              # (1, Np)
    same = labc == labr                                               # (R, Np)
    col_real = labr >= 0                                              # (1, Np)
    row_real = labc >= 0                                              # (R, 1)
    pos_mask = jnp.logical_and(same, col_real)
    neg_mask = jnp.logical_and(jnp.logical_not(same), col_real)

    neg_inf = jnp.float32(-jnp.inf)
    pos_inf = jnp.float32(jnp.inf)
    # Batch-hard mining on squared distances; sqrt deferred to the reduced vectors.
    # (Diagonal self-distance stays inside pos_mask, matching the PyTorch loop.)
    ap2 = jnp.max(jnp.where(pos_mask, dist2, neg_inf), axis=1, keepdims=True)  # (R, 1)
    an2 = jnp.min(jnp.where(neg_mask, dist2, pos_inf), axis=1, keepdims=True)  # (R, 1)
    dist_ap = jnp.sqrt(jnp.maximum(ap2, 1e-12))
    dist_an = jnp.sqrt(jnp.maximum(an2, 1e-12))

    # Row is used iff it is a real row and has at least one real negative
    # (positives always exist via the diagonal). Reuses the masked min.
    valid = jnp.logical_and(an2 < pos_inf, row_real).astype(jnp.float32)       # (R, 1)

    # MarginRankingLoss(margin)(dist_an, dist_ap, y=1) summand:
    # max(0, dist_ap - dist_an + margin).  (dist_an may be +inf for invalid rows;
    # the max(...)*valid keeps everything finite.)
    per_row = jnp.maximum(dist_ap - dist_an + margin, 0.0) * valid             # (R, 1)

    lane = jax.lax.broadcasted_iota(jnp.int32, (1, 8, 128), 2)
    out_ref[...] = jnp.where(lane == 0, jnp.sum(per_row),
                             jnp.where(lane == 1, jnp.sum(valid), 0.0))


def triplet_loss(inputs, labels, margin=0.6, weight=1.0, block_rows=256):
    """Training-mode TripletLoss.forward: returns scalar loss * weight."""
    n, d = inputs.shape

    # Lane-dense feature dim, sublane-aligned row blocks.
    dp = _round_up(d, 128)
    if n <= block_rows:
        r = _round_up(n, 8)
        n_pad = r
    else:
        r = block_rows
        n_pad = _round_up(n, r)
    num_blocks = n_pad // r

    # Keep native dtype (bf16 halves HBM->VMEM bytes and is MXU-native).
    x = inputs
    if n_pad != n or dp != d:
        x = jnp.pad(x, ((0, n_pad - n), (0, dp - d)))

    lab = labels.reshape(n).astype(jnp.int32)
    lab = lab - jnp.min(lab)          # make real labels non-negative; -1 marks padding
    lab = jnp.pad(lab, (0, n_pad - n), constant_values=-1)
    lab_col = lab.reshape(n_pad, 1)   # sublane layout for anchor rows (no in-kernel transpose)
    lab_row = lab.reshape(1, n_pad)   # lane layout for columns

    # Scoped-VMEM budget sized to the real working set (x tiles + (R,Np) temporaries).
    isz = jnp.dtype(x.dtype).itemsize
    est = (2 * r * dp * isz              # anchor block (double-buffered)
           + 2 * n_pad * dp * isz        # resident full feature matrix
           + (n_pad + r) * dp * 4        # f32 casts for the norms
           + 8 * r * n_pad * 4           # dist2 / masks / where temporaries
           + (1 << 20))                  # labels, partial sums, headroom
    vmem_limit = int(min(max(2 * est, 32 * 1024 * 1024), 64 * 1024 * 1024))

    kernel = functools.partial(_triplet_block_kernel, margin=float(margin))
    parts = pl.pallas_call(
        kernel,
        out_shape=jax.ShapeDtypeStruct((num_blocks, 8, 128), jnp.float32),
        grid_spec=pltpu.PrefetchScalarGridSpec(
            num_scalar_prefetch=0,
            grid=(num_blocks,),
            in_specs=[
                pl.BlockSpec((r, dp), lambda i: (i, 0)),       # anchor row block
                pl.BlockSpec((n_pad, dp), lambda i: (0, 0)),   # full x, resident across grid
                pl.BlockSpec((r, 1), lambda i: (i, 0)),        # labels, column layout
                pl.BlockSpec((1, n_pad), lambda i: (0, 0)),    # labels, row layout
            ],
            out_specs=pl.BlockSpec((1, 8, 128), lambda i: (i, 0, 0)),
        ),
        compiler_params=pltpu.CompilerParams(
            dimension_semantics=("parallel",),
            vmem_limit_bytes=vmem_limit),
    )(x, x, lab_col, lab_row)

    # Note: for very large D a K-axis reduction grid with a VMEM gram accumulator
    # would stream x tiles; omitted here since D fits a single lane-padded block.
    sum_terms = jnp.sum(parts[:, 0, 0])
    n_valid = jnp.sum(parts[:, 0, 1])
    # Behavioral difference vs. PyTorch: empty selection -> 0 instead of error/NaN.
    loss = (sum_terms / jnp.maximum(n_valid, 1.0)) * weight
    return loss


def _triplet_loss_ref(inputs, labels, margin=0.6, weight=1.0):
    """Pure-JAX reference mirroring the PyTorch module (training mode)."""
    x = inputs.astype(jnp.float32)
    sq = jnp.sum(x * x, axis=1, keepdims=True)
    dist = jnp.sqrt(jnp.maximum(sq + sq.T - 2.0 * x @ x.T, 1e-12))
    mask = labels[:, None] == labels[None, :]
    dist_ap = jnp.max(jnp.where(mask, dist, -jnp.inf), axis=1)
    dist_an = jnp.min(jnp.where(mask, jnp.inf, dist), axis=1)
    valid = jnp.any(~mask, axis=1).astype(jnp.float32)
    per_row = jnp.maximum(dist_ap - dist_an + margin, 0.0) * valid
    return (jnp.sum(per_row) / jnp.maximum(jnp.sum(valid), 1.0)) * weight


if __name__ == "__main__":
    key = jax.random.PRNGKey(0)
    n, d = 8, 32
    inputs = jax.random.normal(key, (n, d), dtype=jnp.float32)
    # 4 classes x 2 samples each -> every row has positives and negatives.
    labels = jnp.array([0, 0, 1, 1, 2, 2, 3, 3], dtype=jnp.int32)

    loss = triplet_loss(inputs, labels, margin=0.6, weight=1.0)
    jax.block_until_ready(loss)

    ref = _triplet_loss_ref(inputs, labels, margin=0.6, weight=1.0)
    assert jnp.allclose(loss, ref, rtol=1e-5, atol=1e-5), (loss, ref)

    # Native-dtype (bf16) path: half the HBM traffic, MXU-native operands.
    loss_bf16 = triplet_loss(inputs.astype(jnp.bfloat16), labels, margin=0.6, weight=1.0)
    jax.block_until_ready(loss_bf16)
    assert bool(jnp.isfinite(loss_bf16)), loss_bf16

    print("KERNEL_OK")
</pallas_src>

<mosaic_0001>
module attributes {stable_mosaic.version = 11 : i64} {
  func.func @_triplet_block_kernel(%arg0: i32, %arg1: memref<8x128xf32, #tpu.memory_space<vmem>>, %arg2: memref<8x128xf32, #tpu.memory_space<vmem>>, %arg3: memref<8x1xi32, #tpu.memory_space<vmem>>, %arg4: memref<1x8xi32, #tpu.memory_space<vmem>>, %arg5: memref<1x8x128xf32, #tpu.memory_space<vmem>>) attributes {dimension_semantics = [#tpu.dimension_semantics<parallel>], iteration_bounds = array<i64: 1>, scalar_prefetch = 0 : i64, scratch_operands = 0 : i64, tpu.core_type = #tpu.core_type<tc>, window_params = [{transform_indices = @transform_0, window_bounds = array<i64: 8, 128>}, {pipeline_mode = #tpu.pipeline_mode<synchronous>, transform_indices = @transform_1, window_bounds = array<i64: 8, 128>}, {transform_indices = @transform_2, window_bounds = array<i64: 8, 1>}, {pipeline_mode = #tpu.pipeline_mode<synchronous>, transform_indices = @transform_3, window_bounds = array<i64: 1, 8>}, {transform_indices = @transform_4, window_bounds = array<i64: 1, 8, 128>}]} {
    %c0 = arith.constant 0 : index
    %c0_0 = arith.constant 0 : index
    %0 = vector.load %arg1[%c0, %c0_0] : memref<8x128xf32, #tpu.memory_space<vmem>>, vector<8x128xf32>
    %c0_1 = arith.constant 0 : index
    %c0_2 = arith.constant 0 : index
    %1 = vector.load %arg2[%c0_1, %c0_2] : memref<8x128xf32, #tpu.memory_space<vmem>>, vector<8x128xf32>
    %cst = arith.constant dense<0.000000e+00> : vector<8x8xf32>
    %2 = tpu.matmul %0, %1, %cst {dimension_numbers = #tpu.dot_dimension_numbers<[1], [1], [0], [0], [0, 0, 1, 0], [], []>} : vector<8x128xf32>, vector<8x128xf32>, vector<8x8xf32> -> vector<8x8xf32>
    %3 = arith.mulf %0, %0 : vector<8x128xf32>
    %cst_3 = arith.constant dense<0.000000e+00> : vector<8xf32>
    %4 = vector.multi_reduction <add>, %3, %cst_3 [1] : vector<8x128xf32> to vector<8xf32>
    %5 = vector.shape_cast %4 : vector<8xf32> to vector<8x1xf32>
    %6 = arith.mulf %1, %1 : vector<8x128xf32>
    %cst_4 = arith.constant dense<0.000000e+00> : vector<8xf32>
    %7 = vector.multi_reduction <add>, %6, %cst_4 [1] : vector<8x128xf32> to vector<8xf32>
    %8 = vector.shape_cast %7 : vector<8xf32> to vector<8x1xf32>
    %9 = tpu.transpose %8, [1, 0] : vector<8x1xf32> -> vector<1x8xf32>
    %10 = vector.broadcast %5 : vector<8x1xf32> to vector<8x8xf32>
    %11 = vector.broadcast %9 : vector<1x8xf32> to vector<8x8xf32>
    %12 = arith.addf %10, %11 : vector<8x8xf32>
    %cst_5 = arith.constant 2.000000e+00 : f32
    %13 = vector.broadcast %cst_5 : f32 to vector<8x8xf32>
    %14 = arith.mulf %13, %2 : vector<8x8xf32>
    %15 = arith.subf %12, %14 : vector<8x8xf32>
    %c0_6 = arith.constant 0 : index
    %c0_7 = arith.constant 0 : index
    %16 = vector.load %arg3[%c0_6, %c0_7] : memref<8x1xi32, #tpu.memory_space<vmem>>, vector<8x1xi32>
    %c0_8 = arith.constant 0 : index
    %c0_9 = arith.constant 0 : index
    %17 = vector.load %arg4[%c0_8, %c0_9] : memref<1x8xi32, #tpu.memory_space<vmem>>, vector<1x8xi32>
    %18 = vector.broadcast %16 : vector<8x1xi32> to vector<8x8xi32>
    %19 = vector.broadcast %17 : vector<1x8xi32> to vector<8x8xi32>
    %20 = arith.cmpi eq, %18, %19 : vector<8x8xi32>
    %c0_i32 = arith.constant 0 : i32
    %21 = vector.broadcast %c0_i32 : i32 to vector<1x8xi32>
    %22 = arith.cmpi sge, %17, %21 : vector<1x8xi32>
    %c0_i32_10 = arith.constant 0 : i32
    %23 = vector.broadcast %c0_i32_10 : i32 to vector<8x1xi32>
    %24 = arith.cmpi sge, %16, %23 : vector<8x1xi32>
    %25 = vector.broadcast %22 : vector<1x8xi1> to vector<8x8xi1>
    %26 = arith.andi %20, %25 : vector<8x8xi1>
    %cst_11 = arith.constant dense<true> : vector<8x8xi1>
    %27 = arith.xori %20, %cst_11 : vector<8x8xi1>
    %28 = vector.broadcast %22 : vector<1x8xi1> to vector<8x8xi1>
    %29 = arith.andi %27, %28 : vector<8x8xi1>
    %cst_12 = arith.constant 0xFF800000 : f32
    %30 = vector.broadcast %cst_12 : f32 to vector<8x8xf32>
    %31 = arith.select %26, %15, %30 : vector<8x8xi1>, vector<8x8xf32>
    %cst_13 = arith.constant dense<0xFF800000> : vector<8xf32>
    %32 = vector.multi_reduction <maximumf>, %31, %cst_13 [1] : vector<8x8xf32> to vector<8xf32>
    %33 = vector.shape_cast %32 : vector<8xf32> to vector<8x1xf32>
    %cst_14 = arith.constant 0x7F800000 : f32
    %34 = vector.broadcast %cst_14 : f32 to vector<8x8xf32>
    %35 = arith.select %29, %15, %34 : vector<8x8xi1>, vector<8x8xf32>
    %cst_15 = arith.constant dense<0x7F800000> : vector<8xf32>
    %36 = vector.multi_reduction <minimumf>, %35, %cst_15 [1] : vector<8x8xf32> to vector<8xf32>
    %37 = vector.shape_cast %36 : vector<8xf32> to vector<8x1xf32>
    %cst_16 = arith.constant 9.99999996E-13 : f32
    %38 = vector.broadcast %cst_16 : f32 to vector<8x1xf32>
    %39 = arith.maximumf %33, %38 : vector<8x1xf32>
    %40 = math.sqrt %39 : vector<8x1xf32>
    %cst_17 = arith.constant 9.99999996E-13 : f32
    %41 = vector.broadcast %cst_17 : f32 to vector<8x1xf32>
    %42 = arith.maximumf %37, %41 : vector<8x1xf32>
    %43 = math.sqrt %42 : vector<8x1xf32>
    %cst_18 = arith.constant 0x7F800000 : f32
    %44 = vector.broadcast %cst_18 : f32 to vector<8x1xf32>
    %45 = arith.cmpf olt, %37, %44 : vector<8x1xf32>
    %46 = arith.andi %45, %24 : vector<8x1xi1>
    %47 = arith.extui %46 : vector<8x1xi1> to vector<8x1xi32>
    %48 = arith.sitofp %47 : vector<8x1xi32> to vector<8x1xf32>
    %49 = arith.subf %40, %43 : vector<8x1xf32>
    %cst_19 = arith.constant 6.000000e-01 : f32
    %50 = vector.broadcast %cst_19 : f32 to vector<8x1xf32>
    %51 = arith.addf %49, %50 : vector<8x1xf32>
    %cst_20 = arith.constant 0.000000e+00 : f32
    %52 = vector.broadcast %cst_20 : f32 to vector<8x1xf32>
    %53 = arith.maximumf %51, %52 : vector<8x1xf32>
    %54 = arith.mulf %53, %48 : vector<8x1xf32>
    %55 = tpu.iota {dimensions = array<i32: 2>} : vector<1x8x128xi32>
    %c0_i32_21 = arith.constant 0 : i32
    %56 = vector.broadcast %c0_i32_21 : i32 to vector<1x8x128xi32>
    %57 = arith.cmpi eq, %55, %56 : vector<1x8x128xi32>
    %58 = vector.shape_cast %54 : vector<8x1xf32> to vector<1x8x1xf32>
    %cst_22 = arith.constant dense<0.000000e+00> : vector<1xf32>
    %59 = vector.multi_reduction <add>, %58, %cst_22 [1, 2] : vector<1x8x1xf32> to vector<1xf32>
    %60 = vector.shape_cast %59 : vector<1xf32> to vector<1x1x1xf32>
    %61 = vector.extract %60[0, 0, 0] : f32 from vector<1x1x1xf32>
    %c1_i32 = arith.constant 1 : i32
    %62 = vector.broadcast %c1_i32 : i32 to vector<1x8x128xi32>
    %63 = arith.cmpi eq, %55, %62 : vector<1x8x128xi32>
    %64 = vector.shape_cast %48 : vector<8x1xf32> to vector<1x8x1xf32>
    %cst_23 = arith.constant dense<0.000000e+00> : vector<1xf32>
    %65 = vector.multi_reduction <add>, %64, %cst_23 [1, 2] : vector<1x8x1xf32> to vector<1xf32>
    %66 = vector.shape_cast %65 : vector<1xf32> to vector<1x1x1xf32>
    %67 = vector.extract %66[0, 0, 0] : f32 from vector<1x1x1xf32>
    %cst_24 = arith.constant 0.000000e+00 : f32
    %68 = vector.broadcast %67 : f32 to vector<1x8x128xf32>
    %69 = vector.broadcast %cst_24 : f32 to vector<1x8x128xf32>
    %70 = arith.select %63, %68, %69 : vector<1x8x128xi1>, vector<1x8x128xf32>
    %71 = vector.broadcast %61 : f32 to vector<1x8x128xf32>
    %72 = arith.select %57, %71, %70 : vector<1x8x128xi1>, vector<1x8x128xf32>
    %c0_25 = arith.constant 0 : index
    %c0_26 = arith.constant 0 : index
    %c0_27 = arith.constant 0 : index
    %73 = vector.load %arg5[%c0_25, %c0_26, %c0_27] : memref<1x8x128xf32, #tpu.memory_space<vmem>>, vector<1x8x128xf32>
    tpu.vector_store %arg5[%c0_25, %c0_26, %c0_27], %72 {strides = array<i32>} : memref<1x8x128xf32, #tpu.memory_space<vmem>>, vector<1x8x128xf32>,
    return
  }
  func.func @transform_0(%arg0: i32) -> (i32, i32) {
    %c0_i32 = arith.constant 0 : i32
    %c0_i32_0 = arith.constant 0 : i32
    return %arg0, %c0_i32 : i32, i32
  }
  func.func @transform_1(%arg0: i32) -> (i32, i32) {
    %c0_i32 = arith.constant 0 : i32
    %c0_i32_0 = arith.constant 0 : i32
    %c0_i32_1 = arith.constant 0 : i32
    return %c0_i32, %c0_i32_0 : i32, i32
  }
  func.func @transform_2(%arg0: i32) -> (i32, i32) {
    %c0_i32 = arith.constant 0 : i32
    %c0_i32_0 = arith.constant 0 : i32
    return %arg0, %c0_i32 : i32, i32
  }
  func.func @transform_3(%arg0: i32) -> (i32, i32) {
    %c0_i32 = arith.constant 0 : i32
    %c0_i32_0 = arith.constant 0 : i32
    %c0_i32_1 = arith.constant 0 : i32
    return %c0_i32, %c0_i32_0 : i32, i32
  }
  func.func @transform_4(%arg0: i32) -> (i32, i32, i32) {
    %c0_i32 = arith.constant 0 : i32
    %c0_i32_0 = arith.constant 0 : i32
    %c0_i32_1 = arith.constant 0 : i32
    return %arg0, %c0_i32, %c0_i32_0 : i32, i32, i32
  }
}

</mosaic_0001>

<bundles_post_ra>
// kernel: tpu_custom_call.1
= control target key start
LH: loop header
LB: loop body
LE: loop exit
PB: predicated region body
PF: predicated region fallthrough
CT: control target
= control target key end

     0   :  { %9 = vsyncpa [#allocation3], 0  ;;  %s320_s0 = inlined_call_operand.vmem [shape: f32[8,128], index: 0, kind: input, shape index: {}]   ;;  %s321_s1 = inlined_call_operand.hbm [shape: f32[8,128], index: 1, kind: input, shape index: {}]   ;;  %s322_s2 = inlined_call_operand.vmem [shape: s32[8,1], index: 2, kind: input, shape index: {}]   ;;  %s323_s3 = inlined_call_operand.vmem [shape: s32[1,8], index: 3, kind: input, shape index: {}]   ;;  %s324_s4 = inlined_call_operand.hbm [shape: f32[1,8,128], index: 4, kind: output, shape index: {}]  }
   0x1   :  { %10 = vsyncpa [#allocation4], 0  ;;  %s18_s17 = sshll.u32 %s321_s1, 4  ;;  %s270_s18 = smov [#allocation2]   ;;  %s19_s17 = int_to_ptr.hbm [resolvable:$true] %s18_s17 }
   0x2   :  { %s20_s19 = sshll.u32 %s270_s18, 4  ;;  %s21_s19 = int_to_ptr.vmem [resolvable:$true] %s20_s19 }
   0x3   :  { %23 = dma.hbm_to_vmem [thread:$0]  %s19_s17, 128, %s21_s19, [#allocation3]  }
   0x4   :  { %266 = dma.done.wait [#allocation3], 128  }
   0x5   :  { %267 = vsyncadd [#allocation3], 4294967168  ;;  %v271_v0 = vmov 0   ;;  %v33_v1 = vld [vmem:[#allocation2] sm:$0xff]  ;;  %vm112_vm3 = vcmask 64512   ;;  %vm272_vm5 = vmmov 1  }
   0x6   :  { %211 = vset.pattern.permute.xlu1 %v271_v0  ;;  %212 = vset.pattern.permute.xlu0 %v271_v0  ;;  %v96_v2 = vld [vmem:[%s322_s2] sm:$0xff]  ;;  %v57_v3 = vmul.f32 %v33_v1, %v33_v1  ;;  %vm157_vm10 = vcmask 7168   ;;  %v273_v29 = vmov 0.0   ;;  %s191_s29 = sshll.u32 %s324_s4, 4  ;;  %s192_s29 = int_to_ptr.hbm [resolvable:$true] %s191_s29 }
   0x7   :  { %99 = vperm.xlu1 %211, %v96_v2   ;;  %49 = vmatpush.xpose.msra.mxu0 %v33_v1  ;;  %v32_v4 = vld [vmem:[%s320_s0] sm:$0xff]  ;;  %vm104_vm8 = vcmp.ge.s32.totalorder %v96_v2, 0  ;;  %s274_s0 = smov [#allocation5]  }
   0x8   :  { %58 = vadd.xlane.f32.xlu0 %v57_v3  ;;  %v54_v5 = vmul.f32 %v32_v4, %v32_v4  ;;  %v97_v7 = vld [vmem:[%s323_s3] sm:$0x1] }
   0x9   :  { %vm103_vm0 = vcmp.ge.s32.totalorder %v97_v7, 0  ;;  %v213_v11 = vld [vmem:[%s323_s3] ss:$0 sm:$0xff]  ;;  %s189_s3 = sshll.u32 %s274_s0, 4  ;;  %s190_s3 = int_to_ptr.vmem [resolvable:$true] %s189_s3 }
   0xa   :  { %50 = vmatmul.f32.vlgmr.msra.gmra.mxu0 %v32_v4  ;;  %v105_v9 = vsel %vm103_vm0, 1, %v271_v0 }
   0xb   :  { %v106_v12 = vperm.slane %v105_v9, 0 }
   0xd   :  { %vm107_vm1 = vcmp.eq.s32.totalorder %v106_v12, 1 }
  0x10   :  { %55 = vadd.xlane.f32.xlu0 %v54_v5  ;;  %v154_v5 = vlaneseq }
  0x79   :  { %v100_v8 = vpop.permute.xlu1 %99 }
  0x7a   :  { %vm102_vm2 = vcmp.eq.s32.totalorder %v100_v8, %v213_v11 }
  0x7b   :  { %v59_v6 = vpop.xlane.xlu0 %58  ;;  %vm108_vm4 = vmand %vm102_vm2, %vm107_vm1 }
  0x7c   :  { %60 = vxpose.xlu1.b32.start.end [1/1] (short) (narrow) %v59_v6, 8  ;;  %vm109_vm6 = vmxor %vm102_vm2, %vm272_vm5  ;;  %v155_v6 = vand.u32 127, %v154_v5 }
  0x7d   :  { %vm110_vm7 = vmand %vm109_vm6, %vm107_vm1 }
  0x7e   :  { %vm168_vm0 = vcmp.eq.s32.totalorder %v155_v6, 1  ;;  %vm156_vm1 = vcmp.eq.s32.totalorder %v155_v6, 0 }
  0x83   :  { %v56_v14 = vpop.xlane.xlu0 %55 }
  0x87   :  { %v51_v10 = vpop.f32.mrf.mxu0 }
  0x88   :  { %v94_v16 = vmul.f32 2.0, %v51_v10 }
 0x120   :  { %v76_v13 = vpop.trf.xlu1 }
 0x121   :  { %v92_v15 = vperm.slane %v76_v13, 0 }
 0x123   :  { %v93_v17 = vadd.f32 %v92_v15, %v56_v14 }
 0x125   :  { %v95_v18 = vsub.f32 %v93_v17, %v94_v16 }
 0x127   :  { %v111_v19 = vsel %vm108_vm4, %v95_v18, -inf  ;;  %v116_v21 = vsel %vm110_vm7, %v95_v18, inf }
 0x128   :  { %v113_v20 = vsel %vm112_vm3, %v111_v19, -inf  ;;  %v117_v22 = vsel %vm112_vm3, %v116_v21, inf }
 0x129   :  { %114 = vmax.xlane.f32.xlu2 %v113_v20 }
 0x131   :  { %118 = vmin.xlane.f32.xlu2 %v117_v22 }
 0x19c   :  { %v115_v23 = vpop.xlane.xlu2 %114 }
 0x19d   :  { %v120_v24 = vmax.f32 %v115_v23, 1e-12 }
 0x19f   :  { %214 = vrsqrt.f32 %v120_v24  ;;  %vm128_vm12 = vcmp.eq.f32.partialorder %v120_v24, inf  ;;  %v131_v45 = vand.u32 2147483648, %v120_v24  ;;  %vm130_vm14 = vcmp.eq.f32.partialorder %v120_v24, 0.0 }
 0x1a4   :  { %v119_v25 = vpop.xlane.xlu2 %118 }
 0x1a5   :  { %v215_v26 = vpop.eup %214  ;;  %v133_v27 = vmax.f32 %v119_v25, 1e-12  ;;  %vm146_vm9 = vcmp.lt.f32.partialorder %v119_v25, inf }
 0x1a6   :  { %vm147_vm11 = vmand %vm146_vm9, %vm104_vm8  ;;  %v122_v28 = vmul.f32 %v215_v26, %v120_v24 }
 0x1a7   :  { %216 = vrsqrt.f32 %v133_v27  ;;  %v201_v30 = vsel %vm147_vm11, 1.0, %v273_v29  ;;  %vm141_vm13 = vcmp.eq.f32.partialorder %v133_v27, inf  ;;  %v144_v46 = vand.u32 2147483648, %v133_v27 }
 0x1a8   :  { %v169_v31 = vsel %vm157_vm10, %v201_v30, 0.0  ;;  %v123_v32 = vmul.f32 %v215_v26, %v122_v28  ;;  %vm143_vm15 = vcmp.eq.f32.partialorder %v133_v27, 0.0 }
 0x1a9   :  { %170 = vadd.xlane.f32.xlu2 %v169_v31 }
 0x1aa   :  { %v124_v33 = vmul.f32 0.5, %v123_v32 }
 0x1ac   :  { %v125_v34 = vsub.f32 1.5, %v124_v33 }
 0x1ad   :  { %v217_v35 = vpop.eup %216 }
 0x1ae   :  { %v135_v36 = vmul.f32 %v217_v35, %v133_v27  ;;  %v126_v37 = vmul.f32 %v215_v26, %v125_v34 }
 0x1b0   :  { %v136_v38 = vmul.f32 %v217_v35, %v135_v36  ;;  %v127_v40 = vmul.f32 %v126_v37, %v120_v24 }
 0x1b2   :  { %v137_v39 = vmul.f32 0.5, %v136_v38  ;;  %v129_v43 = vsel %vm128_vm12, %v120_v24, %v127_v40 }
 0x1b3   :  { %v132_v48 = vsel %vm130_vm14, %v131_v45, %v129_v43 }
 0x1b4   :  { %v138_v41 = vsub.f32 1.5, %v137_v39 }
 0x1b6   :  { %v139_v42 = vmul.f32 %v217_v35, %v138_v41 }
 0x1b8   :  { %v140_v44 = vmul.f32 %v139_v42, %v133_v27 }
 0x1ba   :  { %v142_v47 = vsel %vm141_vm13, %v133_v27, %v140_v44 }
 0x1bb   :  { %v145_v49 = vsel %vm143_vm15, %v144_v46, %v142_v47 }
 0x1bc   :  { %v150_v50 = vsub.f32 %v132_v48, %v145_v49 }
 0x1be   :  { %v151_v51 = vadd.f32 0.6, %v150_v50 }
 0x1c0   :  { %v152_v52 = vmax.f32 %v151_v51, 0.0 }
 0x1c2   :  { %v153_v53 = vmul.f32 %v201_v30, %v152_v52 }
 0x1c4   :  { %v158_v54 = vsel %vm157_vm10, %v153_v53, 0.0 }
 0x1c5   :  { %159 = vadd.xlane.f32.xlu0 %v158_v54 }
 0x21c   :  { %v171_v55 = vpop.xlane.xlu2 %170 }
 0x21d   :  { %v172_v56 = vrot.slane %v171_v55, 4 }
 0x21f   :  { %v173_v57 = vadd.f32 %v172_v56, %v171_v55 }
 0x221   :  { %v174_v58 = vrot.slane %v173_v57, 2 }
 0x223   :  { %v175_v62 = vadd.f32 %v174_v58, %v173_v57 }
 0x225   :  { %v176_v1 = vrot.slane %v175_v62, 1 }
 0x227   :  { %v177_v4 = vadd.f32 %v176_v1, %v175_v62 }
 0x238   :  { %v160_v59 = vpop.xlane.xlu0 %159 }
 0x239   :  { %v161_v60 = vrot.slane %v160_v59, 4 }
 0x23b   :  { %v162_v61 = vadd.f32 %v161_v60, %v160_v59 }
 0x23d   :  { %v163_v63 = vrot.slane %v162_v61, 2 }
 0x23f   :  { %v164_v0 = vadd.f32 %v163_v63, %v162_v61 }
 0x241   :  { %v165_v2 = vrot.slane %v164_v0, 1 }
 0x243   :  { %v166_v3 = vadd.f32 %v165_v2, %v164_v0 }
 0x245   :  { %202 = vpush %v166_v3 }
 0x246   :  { %204 = vpush %v177_v4 }
 0x276   :  { %s203_s26 = spop %202 }
 0x277   :  { %v181_v7 = vstv %s203_s26  ;;  %s205_s30 = spop %204 }
 0x278   :  { %v179_v8 = vstv %s205_s30 }
 0x279   :  { %v180_v9 = vsel %vm168_vm0, %v179_v8, 0.0 }
 0x27a   :  { %v182_v10 = vsel %vm156_vm1, %v181_v7, %v180_v9 }
 0x27b   :  { %183 = vst [vmem:[#allocation5] sm:$0xff] %v182_v10 }
 0x27c   :  { %194 = dma.vmem_to_hbm [thread:$0]  %s190_s3, 128, %s192_s29, [#allocation4]  }
 0x27d   :  { %268 = dma.done.wait [#allocation4], 128  }
 0x27e   :  { %269 = vsyncadd [#allocation4], 4294967168 }
 0x27f   :  { %199 = vsyncpa [#allocation3], 1 }
 0x280   :  { %200 = vsyncpa [#allocation4], 1 }

</bundles_post_ra>
